<compile_context>
chip_gen: v6e
topology: v6e:2x2x1
jax: 0.10.0
libtpu: 0.0.40
codegen_flags: <defaults>
</compile_context>

<pallas_src>
import jax
import jax.numpy as jnp
from jax import lax
from jax.experimental import pallas as pl
from jax.experimental.pallas import tpu as pltpu

HIDDEN = 64  # fc1 width (fixed by the module)


def _round_up(x, m):
    return ((x + m - 1) // m) * m


def _ranking_kernel(uid_ref, mid_ref, ut_ref, mt_ref, w1_ref, b1_ref, w2_ref, b2_ref, o_ref):
    tb = uid_ref.shape[0]
    nu = ut_ref.shape[0]
    nm = mt_ref.shape[0]

    # In-kernel embedding gather: one-hot (VPU compare) x VMEM-resident table (MXU matmul).
    # Exact: each one-hot row has a single 1.0, so the f32-accumulated dot reproduces the
    # bf16 table row bit-for-bit.
    u_oh = (uid_ref[...] == lax.broadcasted_iota(jnp.int32, (tb, nu), 1)).astype(jnp.bfloat16)
    m_oh = (mid_ref[...] == lax.broadcasted_iota(jnp.int32, (tb, nm), 1)).astype(jnp.bfloat16)
    ue = jnp.dot(u_oh, ut_ref[...], preferred_element_type=jnp.float32).astype(jnp.bfloat16)
    me = jnp.dot(m_oh, mt_ref[...], preferred_element_type=jnp.float32).astype(jnp.bfloat16)

    # fc1: single K = 2*E_pad (=128) MXU matmul on the lane-concatenated activations.
    x = jnp.concatenate([ue, me], axis=-1)                      # (TB, 2*E_pad) bf16
    h = jnp.dot(x, w1_ref[...], preferred_element_type=jnp.float32)
    h = jnp.maximum(h + b1_ref[...], 0.0)                       # bias + ReLU in f32 (VPU)

    # fc2: VPU multiply + lane reduce; (TB, 1) keepdims store (output bytes are negligible).
    o_ref[...] = jnp.sum(h * w2_ref[...], axis=-1, keepdims=True) + b2_ref[0]


def ranking_forward(user_ids, movie_ids, user_table, movie_table, w1, b1, w2, b2):
    """user_ids/movie_ids: (B, 1) int32; user_table: (NU_pad, E_pad) bf16;
    movie_table: (NM_pad, E_pad) bf16; w1: (2*E_pad, 64) bf16; b1: (1, 64) f32;
    w2: (1, 64) f32; b2: (1,) f32.  Returns (B, 1) f32."""
    B = user_ids.shape[0]
    nu_pad, e_pad = user_table.shape
    nm_pad = movie_table.shape[0]

    # Big batch tiles to amortize per-grid-step overhead, but keep >= 2 grid steps when the
    # batch allows so the "parallel" axis can use both TensorCores on v7x.
    b128 = _round_up(B, 128)
    if b128 <= 256:
        tb = b128
    else:
        tb = min(8192, _round_up(pl.cdiv(b128, 2), 128))
    b_pad = _round_up(B, tb)
    if b_pad != B:
        pad = ((0, b_pad - B), (0, 0))
        user_ids = jnp.pad(user_ids, pad)    # pad ids = 0 -> gathers valid row 0, discarded
        movie_ids = jnp.pad(movie_ids, pad)

    grid = (b_pad // tb,)

    id_spec = pl.BlockSpec((tb, 1), lambda i: (i, 0))
    ut_spec = pl.BlockSpec((nu_pad, e_pad), lambda i: (0, 0))       # VMEM-resident
    mt_spec = pl.BlockSpec((nm_pad, e_pad), lambda i: (0, 0))       # VMEM-resident
    w1_spec = pl.BlockSpec((2 * e_pad, HIDDEN), lambda i: (0, 0))   # VMEM-resident
    b1_spec = pl.BlockSpec((1, HIDDEN), lambda i: (0, 0))
    w2_spec = pl.BlockSpec((1, HIDDEN), lambda i: (0, 0))
    b2_spec = pl.BlockSpec(memory_space=pltpu.MemorySpace.SMEM)     # scalar bias
    out_spec = pl.BlockSpec((tb, 1), lambda i: (i, 0))

    cost = pl.CostEstimate(
        flops=(2 * b_pad * (nu_pad + nm_pad) * e_pad        # one-hot gather matmuls
               + 2 * b_pad * (2 * e_pad) * HIDDEN           # fc1
               + 2 * b_pad * HIDDEN),                       # fc2
        transcendentals=0,
        bytes_accessed=(2 * b_pad * 4                       # ids (int32)
                        + (nu_pad + nm_pad) * e_pad * 2     # tables (bf16, read once)
                        + 2 * e_pad * HIDDEN * 2            # w1 (bf16)
                        + 2 * HIDDEN * 4 + 4                # b1, w2, b2 (f32)
                        + b_pad * 4),                       # output (f32)
    )

    y = pl.pallas_call(
        _ranking_kernel,
        out_shape=jax.ShapeDtypeStruct((b_pad, 1), jnp.float32),
        grid=grid,
        in_specs=[id_spec, id_spec, ut_spec, mt_spec, w1_spec, b1_spec, w2_spec, b2_spec],
        out_specs=out_spec,
        compiler_params=pltpu.CompilerParams(dimension_semantics=("parallel",)),
        cost_estimate=cost,
    )(user_ids, movie_ids, user_table, movie_table, w1, b1, w2, b2)

    return y[:B]


class RankingNetworkPallas:
    """JAX/Pallas equivalent of the PyTorch RankingNetwork forward pass."""

    def __init__(self, num_users, num_movies, embedding_size=50, key=None):
        if key is None:
            key = jax.random.PRNGKey(0)
        k_ue, k_me, k_w1, k_b1, k_w2, k_b2 = jax.random.split(key, 6)

        E = embedding_size
        E_pad = _round_up(E, 64)             # 50 -> 64 so the concatenated K is 128
        NU_pad = _round_up(num_users, 16)    # bf16 sublane packing
        NM_pad = _round_up(num_movies, 16)
        self.embedding_size = E
        self.e_pad = E_pad

        # nn.Embedding default init: N(0, 1).  Zero-padded, stored bf16 (VMEM-resident in
        # the kernel; read from HBM once per call).
        ut = jax.random.normal(k_ue, (num_users, E), dtype=jnp.float32)
        mt = jax.random.normal(k_me, (num_movies, E), dtype=jnp.float32)
        self.user_table = jnp.pad(ut, ((0, NU_pad - num_users), (0, E_pad - E))).astype(jnp.bfloat16)
        self.movie_table = jnp.pad(mt, ((0, NM_pad - num_movies), (0, E_pad - E))).astype(jnp.bfloat16)

        # fc1: nn.Linear default init U(-1/sqrt(fan_in), 1/sqrt(fan_in)).  Stored transposed
        # (in, out) as a single stacked (2*E_pad, 64) matrix whose user/movie halves are
        # zero-padded to E_pad rows (matches the zero-padded embedding columns), bf16.
        in1 = 2 * E
        lim1 = 1.0 / float(in1) ** 0.5
        w1 = jax.random.uniform(k_w1, (in1, HIDDEN), dtype=jnp.float32,
                                minval=-lim1, maxval=lim1)
        w1_full = jnp.zeros((2 * E_pad, HIDDEN), jnp.float32)
        w1_full = w1_full.at[:E].set(w1[:E]).at[E_pad:E_pad + E].set(w1[E:])
        self.w1 = w1_full.astype(jnp.bfloat16)
        self.b1 = jax.random.uniform(k_b1, (1, HIDDEN), dtype=jnp.float32,
                                     minval=-lim1, maxval=lim1)

        # fc2: (64, 1) kept as a (1, 64) row vector for the in-kernel VPU reduction.
        lim2 = 1.0 / float(HIDDEN) ** 0.5
        self.w2 = jax.random.uniform(k_w2, (1, HIDDEN), dtype=jnp.float32,
                                     minval=-lim2, maxval=lim2)
        self.b2 = jax.random.uniform(k_b2, (1,), dtype=jnp.float32,
                                     minval=-lim2, maxval=lim2)

    def __call__(self, user_ids, movie_ids):
        # TODO(synk): for production-sized tables, keep them at memory_space=pl.ANY and
        # gather rows with per-row DMA driven by scalar-prefetched ids instead of the
        # VMEM-resident one-hot gather used here for small tables.
        uid = jnp.asarray(user_ids, dtype=jnp.int32).reshape(-1, 1)
        mid = jnp.asarray(movie_ids, dtype=jnp.int32).reshape(-1, 1)
        return ranking_forward(uid, mid, self.user_table, self.movie_table,
                               self.w1, self.b1, self.w2, self.b2)


def _reference_forward(model, user_ids, movie_ids):
    # Pure-JAX reference (same bf16-stored params, f32 math).
    ue = jnp.take(model.user_table.astype(jnp.float32), user_ids, axis=0)
    me = jnp.take(model.movie_table.astype(jnp.float32), movie_ids, axis=0)
    x = jnp.concatenate([ue, me], axis=-1)
    h = jnp.maximum(x @ model.w1.astype(jnp.float32) + model.b1, 0.0)
    return jnp.sum(h * model.w2, axis=-1, keepdims=True) + model.b2.reshape(1, 1)


if __name__ == "__main__":
    num_users, num_movies, embedding_size = 20, 30, 50
    model = RankingNetworkPallas(num_users, num_movies, embedding_size,
                                 key=jax.random.PRNGKey(0))

    ku, km = jax.random.split(jax.random.PRNGKey(0))
    for batch in (8, 300):  # single-tile path and padded multi-tile (2-step grid) path
        user_ids = jax.random.randint(ku, (batch,), 0, num_users, dtype=jnp.int32)
        movie_ids = jax.random.randint(km, (batch,), 0, num_movies, dtype=jnp.int32)

        out = jax.block_until_ready(model(user_ids, movie_ids))
        ref = _reference_forward(model, user_ids, movie_ids)

        assert out.shape == (batch, 1), out.shape
        assert jnp.allclose(out, ref, atol=1e-3, rtol=1e-3), f"mismatch vs reference (batch={batch})"

    print("KERNEL_OK")
</pallas_src>

<mosaic_0001>
module attributes {stable_mosaic.version = 11 : i64} {
  func.func @_ranking_kernel(%arg0: i32, %arg1: memref<128x1xi32, #tpu.memory_space<vmem>>, %arg2: memref<128x1xi32, #tpu.memory_space<vmem>>, %arg3: memref<32x64xbf16, #tpu.memory_space<vmem>>, %arg4: memref<32x64xbf16, #tpu.memory_space<vmem>>, %arg5: memref<128x64xbf16, #tpu.memory_space<vmem>>, %arg6: memref<1x64xf32, #tpu.memory_space<vmem>>, %arg7: memref<1x64xf32, #tpu.memory_space<vmem>>, %arg8: memref<1xf32, #tpu.memory_space<smem>>, %arg9: memref<128x1xf32, #tpu.memory_space<vmem>>) attributes {dimension_semantics = [#tpu.dimension_semantics<parallel>], iteration_bounds = array<i64: 1>, scalar_prefetch = 0 : i64, scratch_operands = 0 : i64, tpu.core_type = #tpu.core_type<tc>, window_params = [{transform_indices = @transform_0, window_bounds = array<i64: 128, 1>}, {transform_indices = @transform_1, window_bounds = array<i64: 128, 1>}, {pipeline_mode = #tpu.pipeline_mode<synchronous>, transform_indices = @transform_2, window_bounds = array<i64: 32, 64>}, {pipeline_mode = #tpu.pipeline_mode<synchronous>, transform_indices = @transform_3, window_bounds = array<i64: 32, 64>}, {pipeline_mode = #tpu.pipeline_mode<synchronous>, transform_indices = @transform_4, window_bounds = array<i64: 128, 64>}, {pipeline_mode = #tpu.pipeline_mode<synchronous>, transform_indices = @transform_5, window_bounds = array<i64: 1, 64>}, {pipeline_mode = #tpu.pipeline_mode<synchronous>, transform_indices = @transform_6, window_bounds = array<i64: 1, 64>}, {transform_indices = @transform_7, window_bounds = array<i64: 1>}, {transform_indices = @transform_8, window_bounds = array<i64: 128, 1>}]} {
    %c0 = arith.constant 0 : index
    %c0_0 = arith.constant 0 : index
    %0 = vector.load %arg1[%c0, %c0_0] : memref<128x1xi32, #tpu.memory_space<vmem>>, vector<128x1xi32>
    %1 = tpu.iota {dimensions = array<i32: 1>} : vector<128x32xi32>
    %2 = vector.broadcast %0 : vector<128x1xi32> to vector<128x32xi32>
    %3 = arith.cmpi eq, %2, %1 : vector<128x32xi32>
    %4 = arith.extui %3 : vector<128x32xi1> to vector<128x32xi32>
    %5 = arith.sitofp %4 : vector<128x32xi32> to vector<128x32xf32>
    %6 = arith.truncf %5 : vector<128x32xf32> to vector<128x32xbf16>
    %c0_1 = arith.constant 0 : index
    %c0_2 = arith.constant 0 : index
    %7 = vector.load %arg2[%c0_1, %c0_2] : memref<128x1xi32, #tpu.memory_space<vmem>>, vector<128x1xi32>
    %8 = tpu.iota {dimensions = array<i32: 1>} : vector<128x32xi32>
    %9 = vector.broadcast %7 : vector<128x1xi32> to vector<128x32xi32>
    %10 = arith.cmpi eq, %9, %8 : vector<128x32xi32>
    %11 = arith.extui %10 : vector<128x32xi1> to vector<128x32xi32>
    %12 = arith.sitofp %11 : vector<128x32xi32> to vector<128x32xf32>
    %13 = arith.truncf %12 : vector<128x32xf32> to vector<128x32xbf16>
    %c0_3 = arith.constant 0 : index
    %c0_4 = arith.constant 0 : index
    %14 = vector.load %arg3[%c0_3, %c0_4] : memref<32x64xbf16, #tpu.memory_space<vmem>>, vector<32x64xbf16>
    %cst = arith.constant dense<0.000000e+00> : vector<128x64xf32>
    %15 = tpu.matmul %6, %14, %cst {dimension_numbers = #tpu.dot_dimension_numbers<[1], [0], [0], [1], [0, 0, 1, 1], [], []>} : vector<128x32xbf16>, vector<32x64xbf16>, vector<128x64xf32> -> vector<128x64xf32>
    %16 = arith.truncf %15 : vector<128x64xf32> to vector<128x64xbf16>
    %c0_5 = arith.constant 0 : index
    %c0_6 = arith.constant 0 : index
    %17 = vector.load %arg4[%c0_5, %c0_6] : memref<32x64xbf16, #tpu.memory_space<vmem>>, vector<32x64xbf16>
    %cst_7 = arith.constant dense<0.000000e+00> : vector<128x64xf32>
    %18 = tpu.matmul %13, %17, %cst_7 {dimension_numbers = #tpu.dot_dimension_numbers<[1], [0], [0], [1], [0, 0, 1, 1], [], []>} : vector<128x32xbf16>, vector<32x64xbf16>, vector<128x64xf32> -> vector<128x64xf32>
    %19 = arith.truncf %18 : vector<128x64xf32> to vector<128x64xbf16>
    %20 = tpu.concatenate %16, %19 in 1 : vector<128x64xbf16>, vector<128x64xbf16> -> vector<128x128xbf16>
    %c0_8 = arith.constant 0 : index
    %c0_9 = arith.constant 0 : index
    %21 = vector.load %arg5[%c0_8, %c0_9] : memref<128x64xbf16, #tpu.memory_space<vmem>>, vector<128x64xbf16>
    %cst_10 = arith.constant dense<0.000000e+00> : vector<128x64xf32>
    %22 = tpu.matmul %20, %21, %cst_10 {dimension_numbers = #tpu.dot_dimension_numbers<[1], [0], [0], [1], [0, 0, 1, 1], [], []>} : vector<128x128xbf16>, vector<128x64xbf16>, vector<128x64xf32> -> vector<128x64xf32>
    %c0_11 = arith.constant 0 : index
    %c0_12 = arith.constant 0 : index
    %23 = vector.load %arg6[%c0_11, %c0_12] : memref<1x64xf32, #tpu.memory_space<vmem>>, vector<1x64xf32>
    %24 = vector.broadcast %23 : vector<1x64xf32> to vector<128x64xf32>
    %25 = arith.addf %22, %24 : vector<128x64xf32>
    %cst_13 = arith.constant 0.000000e+00 : f32
    %26 = vector.broadcast %cst_13 : f32 to vector<128x64xf32>
    %27 = arith.maximumf %25, %26 : vector<128x64xf32>
    %c0_14 = arith.constant 0 : index
    %c0_15 = arith.constant 0 : index
    %28 = vector.load %arg7[%c0_14, %c0_15] : memref<1x64xf32, #tpu.memory_space<vmem>>, vector<1x64xf32>
    %29 = vector.broadcast %28 : vector<1x64xf32> to vector<128x64xf32>
    %30 = arith.mulf %27, %29 : vector<128x64xf32>
    %cst_16 = arith.constant dense<0.000000e+00> : vector<128xf32>
    %31 = vector.multi_reduction <add>, %30, %cst_16 [1] : vector<128x64xf32> to vector<128xf32>
    %32 = vector.shape_cast %31 : vector<128xf32> to vector<128x1xf32>
    %c0_17 = arith.constant 0 : index
    %33 = memref.load %arg8[%c0_17] : memref<1xf32, #tpu.memory_space<smem>>
    %34 = vector.broadcast %33 : f32 to vector<128x1xf32>
    %35 = arith.addf %32, %34 : vector<128x1xf32>
    %c0_18 = arith.constant 0 : index
    %c0_19 = arith.constant 0 : index
    %36 = vector.load %arg9[%c0_18, %c0_19] : memref<128x1xf32, #tpu.memory_space<vmem>>, vector<128x1xf32>
    tpu.vector_store %arg9[%c0_18, %c0_19], %35 {strides = array<i32>} : memref<128x1xf32, #tpu.memory_space<vmem>>, vector<128x1xf32>,
    return
  }
  func.func @transform_0(%arg0: i32) -> (i32, i32) {
    %c0_i32 = arith.constant 0 : i32
    %c0_i32_0 = arith.constant 0 : i32
    return %arg0, %c0_i32 : i32, i32
  }
  func.func @transform_1(%arg0: i32) -> (i32, i32) {
    %c0_i32 = arith.constant 0 : i32
    %c0_i32_0 = arith.constant 0 : i32
    return %arg0, %c0_i32 : i32, i32
  }
  func.func @transform_2(%arg0: i32) -> (i32, i32) {
    %c0_i32 = arith.constant 0 : i32
    %c0_i32_0 = arith.constant 0 : i32
    %c0_i32_1 = arith.constant 0 : i32
    return %c0_i32, %c0_i32_0 : i32, i32
  }
  func.func @transform_3(%arg0: i32) -> (i32, i32) {
    %c0_i32 = arith.constant 0 : i32
    %c0_i32_0 = arith.constant 0 : i32
    %c0_i32_1 = arith.constant 0 : i32
    return %c0_i32, %c0_i32_0 : i32, i32
  }
  func.func @transform_4(%arg0: i32) -> (i32, i32) {
    %c0_i32 = arith.constant 0 : i32
    %c0_i32_0 = arith.constant 0 : i32
    %c0_i32_1 = arith.constant 0 : i32
    return %c0_i32, %c0_i32_0 : i32, i32
  }
  func.func @transform_5(%arg0: i32) -> (i32, i32) {
    %c0_i32 = arith.constant 0 : i32
    %c0_i32_0 = arith.constant 0 : i32
    %c0_i32_1 = arith.constant 0 : i32
    return %c0_i32, %c0_i32_0 : i32, i32
  }
  func.func @transform_6(%arg0: i32) -> (i32, i32) {
    %c0_i32 = arith.constant 0 : i32
    %c0_i32_0 = arith.constant 0 : i32
    %c0_i32_1 = arith.constant 0 : i32
    return %c0_i32, %c0_i32_0 : i32, i32
  }
  func.func @transform_7(%arg0: i32) -> i32 {
    %c0_i32 = arith.constant 0 : i32
    %c0_i32_0 = arith.constant 0 : i32
    return %c0_i32 : i32
  }
  func.func @transform_8(%arg0: i32) -> (i32, i32) {
    %c0_i32 = arith.constant 0 : i32
    %c0_i32_0 = arith.constant 0 : i32
    return %arg0, %c0_i32 : i32, i32
  }
}

</mosaic_0001>

<bundles_post_ra>
// kernel: tpu_custom_call.1
= control target key start
LH: loop header
LB: loop body
LE: loop exit
PB: predicated region body
PF: predicated region fallthrough
CT: control target
= control target key end

     0   :  { %v1118_v0 = vmov 0   ;;  %v47_v37 = vlaneseq  ;;  %vm289_vm4 = vcmask 261120   ;;  %v1119_v43 = vmov 0.0   ;;  %s1120_s19 = smov 64   ;;  %s1513_s1 = inlined_call_operand.vmem [shape: s32[128,1], index: 1, kind: input, shape index: {}]   ;;  %s1514_s3 = inlined_call_operand.vmem [shape: bf16[32,64], index: 3, kind: input, shape index: {}]   ;;  %s1515_s2 = inlined_call_operand.vmem [shape: bf16[32,64], index: 2, kind: input, shape index: {}]   ;;  %s1516_s0 = inlined_call_operand.vmem [shape: s32[128,1], index: 0, kind: input, shape index: {}]   ;;  %s1517_s4 = inlined_call_operand.vmem [shape: bf16[128,64], index: 4, kind: input, shape index: {}]   ;;  %s1518_s5 = inlined_call_operand.vmem [shape: f32[1,64], index: 5, kind: input, shape index: {}]   ;;  %s1519_s6 = inlined_call_operand.vmem [shape: f32[1,64], index: 6, kind: input, shape index: {}]   ;;  %s1520_s7 = inlined_call_operand.<no memory space> [shape: f32[1], index: 7, kind: input, shape index: {}]   ;;  %s1521_s8 = inlined_call_operand.vmem [shape: f32[128,1], index: 8, kind: output, shape index: {}]  }
   0x1   :  { %1105 = vset.pattern.permute.xlu1 %v1118_v0  ;;  %1104 = vset.pattern.permute.xlu0 %v1118_v0  ;;  %v155_v1 = vld [vmem:[%s1513_s1 + $0x10] sm:$0xff]  ;;  %v153_v2 = vld [vmem:[%s1513_s1] sm:$0xff]  ;;  %v156_v3 = vld [vmem:[%s1513_s1 + $0x18] sm:$0xff] }
   0x2   :  { %176 = vperm.xlu1 %1105, %v155_v1   ;;  %170 = vperm.xlu0 %1104, %v153_v2   ;;  %v154_v4 = vld [vmem:[%s1513_s1 + $0x8] sm:$0xff]  ;;  %v157_v6 = vld [vmem:[%s1513_s1 + $0x20] sm:$0xff]  ;;  %v160_v7 = vld [vmem:[%s1513_s1 + $0x38] sm:$0xff]  ;;  %v1274_v38 = vand.u32 127, %v47_v37 }
   0x3   :  { %v158_v5 = vld [vmem:[%s1513_s1 + $0x28] sm:$0xff]  ;;  %v159_v8 = vld [vmem:[%s1513_s1 + $0x30] sm:$0xff]  ;;  %v1107_v10 = vld [vmem:[%s1514_s3] sm:$0xff]  }
   0x4   :  { %v1106_v9 = vld [vmem:[%s1514_s3 + $0x8] sm:$0xff]   ;;  %v161_v12 = vld [vmem:[%s1513_s1 + $0x40] sm:$0xff]  ;;  %v164_v13 = vld [vmem:[%s1513_s1 + $0x58] sm:$0xff] }
   0x5   :  { %v162_v11 = vld [vmem:[%s1513_s1 + $0x48] sm:$0xff]  ;;  %1033 = vmatprep.subr.bf16.mxu1 %v1106_v9  ;;  %v163_v14 = vld [vmem:[%s1513_s1 + $0x50] sm:$0xff]  ;;  %v165_v16 = vld [vmem:[%s1513_s1 + $0x60] sm:$0xff] }
   0x6   :  { %179 = vperm.xlu1 %1105, %v156_v3   ;;  %173 = vperm.xlu0 %1104, %v154_v4   ;;  %v166_v15 = vld [vmem:[%s1513_s1 + $0x68] sm:$0xff]  ;;  %v168_v17 = vld [vmem:[%s1513_s1 + $0x78] sm:$0xff]  ;;  %v167_v18 = vld [vmem:[%s1513_s1 + $0x70] sm:$0xff] }
   0x7   :  { %1034 = vmatpush3.bf16.msra.mxu1 %v1106_v9  ;;  %v1108_v19 = vld [vmem:[%s1515_s2 + $0x8] sm:$0xff]   ;;  %v31_v21 = vld [vmem:[%s1516_s0] sm:$0xff]  ;;  %v34_v23 = vld [vmem:[%s1516_s0 + $0x18] sm:$0xff] }
   0x8   :  { %1035 = vmatprep.subr.bf16.mxu1 %v1107_v10  ;;  %v32_v20 = vld [vmem:[%s1516_s0 + $0x8] sm:$0xff]  ;;  %1013 = vmatprep.subr.bf16.mxu0 %v1108_v19  ;;  %v1109_v22 = vld [vmem:[%s1515_s2] sm:$0xff]   ;;  %v33_v24 = vld [vmem:[%s1516_s0 + $0x10] sm:$0xff] }
   0x9   :  { %1014 = vmatpush3.bf16.msra.mxu0 %v1108_v19  ;;  %v36_v25 = vld [vmem:[%s1516_s0 + $0x28] sm:$0xff]  ;;  %v35_v26 = vld [vmem:[%s1516_s0 + $0x20] sm:$0xff]  ;;  %v38_v27 = vld [vmem:[%s1516_s0 + $0x38] sm:$0xff] }
   0xa   :  { %185 = vperm.xlu1 %1105, %v158_v5   ;;  %182 = vperm.xlu0 %1104, %v157_v6   ;;  %v37_v28 = vld [vmem:[%s1516_s0 + $0x30] sm:$0xff]  ;;  %v40_v29 = vld [vmem:[%s1516_s0 + $0x48] sm:$0xff]  ;;  %v39_v30 = vld [vmem:[%s1516_s0 + $0x40] sm:$0xff] }
   0xb   :  { %1036 = vmatpush3.bf16.msra.mxu1 %v1107_v10  ;;  %1015 = vmatprep.subr.bf16.mxu0 %v1109_v22  ;;  %v42_v31 = vld [vmem:[%s1516_s0 + $0x58] sm:$0xff]  ;;  %v41_v32 = vld [vmem:[%s1516_s0 + $0x50] sm:$0xff]  ;;  %v44_v33 = vld [vmem:[%s1516_s0 + $0x68] sm:$0xff] }
   0xc   :  { %v43_v34 = vld [vmem:[%s1516_s0 + $0x60] sm:$0xff]  ;;  %v46_v35 = vld [vmem:[%s1516_s0 + $0x78] sm:$0xff]  ;;  %v45_v36 = vld [vmem:[%s1516_s0 + $0x70] sm:$0xff] }
   0xd   :  { %1016 = vmatpush3.bf16.msra.mxu0 %v1109_v22 }
   0xe   :  { %191 = vperm.xlu1 %1105, %v160_v7   ;;  %188 = vperm.xlu0 %1104, %v159_v8  }
  0x12   :  { %197 = vperm.xlu1 %1105, %v162_v11   ;;  %194 = vperm.xlu0 %1104, %v161_v12  }
  0x16   :  { %203 = vperm.xlu1 %1105, %v164_v13   ;;  %200 = vperm.xlu0 %1104, %v163_v14  }
  0x1a   :  { %209 = vperm.xlu1 %1105, %v166_v15   ;;  %206 = vperm.xlu0 %1104, %v165_v16  }
  0x1e   :  { %215 = vperm.xlu1 %1105, %v168_v17   ;;  %212 = vperm.xlu0 %1104, %v167_v18  }
  0x22   :  { %53 = vperm.xlu1 %1105, %v32_v20   ;;  %50 = vperm.xlu0 %1104, %v31_v21  }
  0x26   :  { %59 = vperm.xlu1 %1105, %v34_v23   ;;  %56 = vperm.xlu0 %1104, %v33_v24  }
  0x2a   :  { %65 = vperm.xlu1 %1105, %v36_v25   ;;  %62 = vperm.xlu0 %1104, %v35_v26  }
  0x2e   :  { %71 = vperm.xlu1 %1105, %v38_v27   ;;  %68 = vperm.xlu0 %1104, %v37_v28  }
  0x32   :  { %77 = vperm.xlu1 %1105, %v40_v29   ;;  %74 = vperm.xlu0 %1104, %v39_v30  }
  0x36   :  { %83 = vperm.xlu1 %1105, %v42_v31   ;;  %80 = vperm.xlu0 %1104, %v41_v32  }
  0x3a   :  { %89 = vperm.xlu1 %1105, %v44_v33   ;;  %86 = vperm.xlu0 %1104, %v43_v34  }
  0x3e   :  { %95 = vperm.xlu1 %1105, %v46_v35   ;;  %92 = vperm.xlu0 %1104, %v45_v36  }
  0x7d   :  { %v177_v39 = vpop.permute.xlu1 %176  ;;  %v171_v40 = vpop.permute.xlu0 %170 }
  0x7e   :  { %vm219_vm0 = vcmp.eq.s32.totalorder %v177_v39, %v1274_v38  ;;  %vm217_vm1 = vcmp.eq.s32.totalorder %v171_v40, %v1274_v38 }
  0x7f   :  { %v933_v44 = vsel %vm219_vm0, 1.0, %v1119_v43  ;;  %v931_v45 = vsel %vm217_vm1, 1.0, %v1119_v43 }
  0x81   :  { %v180_v41 = vpop.permute.xlu1 %179  ;;  %v174_v42 = vpop.permute.xlu0 %173 }
  0x82   :  { %vm220_vm2 = vcmp.eq.s32.totalorder %v180_v41, %v1274_v38  ;;  %vm218_vm3 = vcmp.eq.s32.totalorder %v174_v42, %v1274_v38 }
  0x83   :  { %v934_v46 = vsel %vm220_vm2, 1.0, %v1119_v43  ;;  %v932_v47 = vsel %vm218_vm3, 1.0, %v1119_v43 }
  0x84   :  { %v266_v48 = vpack.c.bf16 %v934_v46, %v933_v44  ;;  %v265_v49 = vpack.c.bf16 %v932_v47, %v931_v45 }
  0x85   :  { %v186_v50 = vpop.permute.xlu1 %185  ;;  %v183_v51 = vpop.permute.xlu0 %182 }
  0x86   :  { %vm222_vm5 = vcmp.eq.s32.totalorder %v186_v50, %v1274_v38  ;;  %vm221_vm6 = vcmp.eq.s32.totalorder %v183_v51, %v1274_v38  ;;  %1037 = vmatprep.mubr.msk.bf16.mxu1 %vm289_vm4, %v265_v49 }
  0x87   :  { %v936_v52 = vsel %vm222_vm5, 1.0, %v1119_v43  ;;  %v935_v53 = vsel %vm221_vm6, 1.0, %v1119_v43  ;;  %1038 = vmatmul.mubr.msk.bf16.vlgmr.msra.gmra.mxu1 %vm289_vm4, %v266_v48 }
  0x88   :  { %v267_v54 = vpack.c.bf16 %v936_v52, %v935_v53 }
  0x89   :  { %v192_v55 = vpop.permute.xlu1 %191  ;;  %v189_v56 = vpop.permute.xlu0 %188 }
  0x8a   :  { %vm224_vm7 = vcmp.eq.s32.totalorder %v192_v55, %v1274_v38  ;;  %vm223_vm8 = vcmp.eq.s32.totalorder %v189_v56, %v1274_v38  ;;  %1041 = vmatprep.mubr.msk.bf16.mxu1 %vm289_vm4, %v267_v54 }
  0x8b   :  { %v938_v57 = vsel %vm224_vm7, 1.0, %v1119_v43  ;;  %v937_v58 = vsel %vm223_vm8, 1.0, %v1119_v43 }
  0x8c   :  { %v268_v59 = vpack.c.bf16 %v938_v57, %v937_v58  ;;  %v1110_v58 = vld [vmem:[%s1517_s4 + $0x38] sm:$0xff]  }
  0x8d   :  { %v198_v60 = vpop.permute.xlu1 %197  ;;  %v195_v61 = vpop.permute.xlu0 %194  ;;  %1053 = vmatprep.subr.bf16.mxu0 %v1110_v58  ;;  %1085 = vmatprep.subr.bf16.mxu1 %v1110_v58 }
  0x8e   :  { %vm226_vm9 = vcmp.eq.s32.totalorder %v198_v60, %v1274_v38  ;;  %vm225_vm10 = vcmp.eq.s32.totalorder %v195_v61, %v1274_v38  ;;  %1093 = vmatpush3.bf16.msra.mxu1 %v1110_v58  ;;  %v1114_v60 = vld [vmem:[%s1517_s4 + $0x18] sm:$0xff]   ;;  %v1115_v61 = vld [vmem:[%s1517_s4 + $0x10] sm:$0xff]  }
  0x8f   :  { %v940_v62 = vsel %vm226_vm9, 1.0, %v1119_v43  ;;  %v939_v63 = vsel %vm225_vm10, 1.0, %v1119_v43  ;;  %1042 = vmatmul.mubr.msk.bf16.gmra.mxu1 %vm289_vm4, %v268_v59  ;;  %v1111_v59 = vld [vmem:[%s1517_s4 + $0x30] sm:$0xff]  }
  0x90   :  { %v269_v0 = vpack.c.bf16 %v940_v62, %v939_v63  ;;  %1086 = vmatprep.subr.bf16.mxu1 %v1111_v59  ;;  %v1116_v62 = vld [vmem:[%s1517_s4 + $0x8] sm:$0xff]   ;;  %v1117_v63 = vld [vmem:[%s1517_s4] sm:$0xff]  }
  0x91   :  { %v204_v1 = vpop.permute.xlu1 %203  ;;  %v201_v2 = vpop.permute.xlu0 %200 }
  0x92   :  { %vm228_vm11 = vcmp.eq.s32.totalorder %v204_v1, %v1274_v38  ;;  %vm227_vm12 = vcmp.eq.s32.totalorder %v201_v2, %v1274_v38  ;;  %1045 = vmatprep.mubr.msk.bf16.mxu1 %vm289_vm4, %v269_v0  ;;  %1094 = vmatpush3.bf16.msra.mxu1 %v1111_v59 }
  0x93   :  { %v942_v3 = vsel %vm228_vm11, 1.0, %v1119_v43  ;;  %v941_v4 = vsel %vm227_vm12, 1.0, %v1119_v43 }
  0x94   :  { %v270_v5 = vpack.c.bf16 %v942_v3, %v941_v4 }
  0x95   :  { %v210_v6 = vpop.permute.xlu1 %209  ;;  %v207_v7 = vpop.permute.xlu0 %206 }
  0x96   :  { %vm230_vm13 = vcmp.eq.s32.totalorder %v210_v6, %v1274_v38  ;;  %vm229_vm14 = vcmp.eq.s32.totalorder %v207_v7, %v1274_v38 }
  0x97   :  { %v944_v8 = vsel %vm230_vm13, 1.0, %v1119_v43  ;;  %v943_v9 = vsel %vm229_vm14, 1.0, %v1119_v43  ;;  %1046 = vmatmul.mubr.msk.bf16.gmra.mxu1 %vm289_vm4, %v270_v5 }
  0x98   :  { %v271_v10 = vpack.c.bf16 %v944_v8, %v943_v9 }
  0x99   :  { %v216_v11 = vpop.permute.xlu1 %215  ;;  %v213_v12 = vpop.permute.xlu0 %212 }
  0x9a   :  { %vm232_vm15 = vcmp.eq.s32.totalorder %v216_v11, %v1274_v38  ;;  %vm231_vm0 = vcmp.eq.s32.totalorder %v213_v12, %v1274_v38  ;;  %1049 = vmatprep.mubr.msk.bf16.mxu1 %vm289_vm4, %v271_v10 }
  0x9b   :  { %v946_v13 = vsel %vm232_vm15, 1.0, %v1119_v43  ;;  %v945_v14 = vsel %vm231_vm0, 1.0, %v1119_v43 }
  0x9c   :  { %v272_v15 = vpack.c.bf16 %v946_v13, %v945_v14 }
  0x9d   :  { %v54_v16 = vpop.permute.xlu1 %53  ;;  %v51_v17 = vpop.permute.xlu0 %50 }
  0x9e   :  { %vm98_vm1 = vcmp.eq.s32.totalorder %v54_v16, %v1274_v38  ;;  %vm97_vm2 = vcmp.eq.s32.totalorder %v51_v17, %v1274_v38 }
  0x9f   :  { %v916_v18 = vsel %vm98_vm1, 1.0, %v1119_v43  ;;  %v915_v19 = vsel %vm97_vm2, 1.0, %v1119_v43  ;;  %1050 = vmatmul.mubr.msk.bf16.gmra.mxu1 %vm289_vm4, %v272_v15  ;;  %vm894_vm2 = vcmask 7168  }
  0xa0   :  { %v145_v20 = vpack.c.bf16 %v916_v18, %v915_v19 }
  0xa1   :  { %v60_v21 = vpop.permute.xlu1 %59  ;;  %v57_v22 = vpop.permute.xlu0 %56 }
  0xa2   :  { %vm100_vm3 = vcmp.eq.s32.totalorder %v60_v21, %v1274_v38  ;;  %vm99_vm5 = vcmp.eq.s32.totalorder %v57_v22, %v1274_v38  ;;  %1017 = vmatprep.mubr.msk.bf16.mxu0 %vm289_vm4, %v145_v20 }
  0xa3   :  { %v918_v23 = vsel %vm100_vm3, 1.0, %v1119_v43  ;;  %v917_v24 = vsel %vm99_vm5, 1.0, %v1119_v43 }
  0xa4   :  { %v146_v25 = vpack.c.bf16 %v918_v23, %v917_v24 }
  0xa5   :  { %v66_v26 = vpop.permute.xlu1 %65  ;;  %v63_v27 = vpop.permute.xlu0 %62 }
  0xa6   :  { %vm102_vm6 = vcmp.eq.s32.totalorder %v66_v26, %v1274_v38  ;;  %vm101_vm7 = vcmp.eq.s32.totalorder %v63_v27, %v1274_v38  ;;  %1018 = vmatmul.mubr.msk.bf16.vlgmr.msra.gmra.mxu0 %vm289_vm4, %v146_v25 }
  0xa7   :  { %v920_v28 = vsel %vm102_vm6, 1.0, %v1119_v43  ;;  %v919_v29 = vsel %vm101_vm7, 1.0, %v1119_v43  ;;  %1054 = vmatpush3.bf16.msra.mxu0 %v1110_v58 }
  0xa8   :  { %v147_v30 = vpack.c.bf16 %v920_v28, %v919_v29  ;;  %1055 = vmatprep.subr.bf16.mxu0 %v1111_v59 }
  0xa9   :  { %v72_v31 = vpop.permute.xlu1 %71  ;;  %v69_v32 = vpop.permute.xlu0 %68 }
  0xaa   :  { %vm104_vm8 = vcmp.eq.s32.totalorder %v72_v31, %v1274_v38  ;;  %vm103_vm9 = vcmp.eq.s32.totalorder %v69_v32, %v1274_v38  ;;  %1021 = vmatprep.mubr.msk.bf16.mxu0 %vm289_vm4, %v147_v30 }
  0xab   :  { %v922_v33 = vsel %vm104_vm8, 1.0, %v1119_v43  ;;  %v921_v34 = vsel %vm103_vm9, 1.0, %v1119_v43  ;;  %1056 = vmatpush3.bf16.msra.mxu0 %v1111_v59 }
  0xac   :  { %v148_v35 = vpack.c.bf16 %v922_v33, %v921_v34 }
  0xad   :  { %v78_v36 = vpop.permute.xlu1 %77  ;;  %v75_v37 = vpop.permute.xlu0 %74 }
  0xae   :  { %vm106_vm10 = vcmp.eq.s32.totalorder %v78_v36, %v1274_v38  ;;  %vm105_vm11 = vcmp.eq.s32.totalorder %v75_v37, %v1274_v38  ;;  %1022 = vmatmul.mubr.msk.bf16.gmra.mxu0 %vm289_vm4, %v148_v35 }
  0xaf   :  { %v924_v39 = vsel %vm106_vm10, 1.0, %v1119_v43  ;;  %v923_v40 = vsel %vm105_vm11, 1.0, %v1119_v43 }
  0xb0   :  { %v149_v41 = vpack.c.bf16 %v924_v39, %v923_v40 }
  0xb1   :  { %v84_v42 = vpop.permute.xlu1 %83  ;;  %v81_v44 = vpop.permute.xlu0 %80 }
  0xb2   :  { %vm108_vm12 = vcmp.eq.s32.totalorder %v84_v42, %v1274_v38  ;;  %vm107_vm13 = vcmp.eq.s32.totalorder %v81_v44, %v1274_v38  ;;  %1025 = vmatprep.mubr.msk.bf16.mxu0 %vm289_vm4, %v149_v41 }
  0xb3   :  { %v926_v45 = vsel %vm108_vm12, 1.0, %v1119_v43  ;;  %v925_v46 = vsel %vm107_vm13, 1.0, %v1119_v43 }
  0xb4   :  { %v150_v47 = vpack.c.bf16 %v926_v45, %v925_v46 }
  0xb5   :  { %v90_v48 = vpop.permute.xlu1 %89  ;;  %v87_v49 = vpop.permute.xlu0 %86 }
  0xb6   :  { %vm110_vm14 = vcmp.eq.s32.totalorder %v90_v48, %v1274_v38  ;;  %vm109_vm15 = vcmp.eq.s32.totalorder %v87_v49, %v1274_v38  ;;  %1026 = vmatmul.mubr.msk.bf16.gmra.mxu0 %vm289_vm4, %v150_v47 }
  0xb7   :  { %v928_v50 = vsel %vm110_vm14, 1.0, %v1119_v43  ;;  %v927_v51 = vsel %vm109_vm15, 1.0, %v1119_v43 }
  0xb8   :  { %v151_v52 = vpack.c.bf16 %v928_v50, %v927_v51 }
  0xb9   :  { %v96_v53 = vpop.permute.xlu1 %95  ;;  %v93_v54 = vpop.permute.xlu0 %92 }
  0xba   :  { %vm112_vm0 = vcmp.eq.s32.totalorder %v96_v53, %v1274_v38  ;;  %vm111_vm1 = vcmp.eq.s32.totalorder %v93_v54, %v1274_v38  ;;  %1029 = vmatprep.mubr.msk.bf16.mxu0 %vm289_vm4, %v151_v52  ;;  %v1112_v38 = vld [vmem:[%s1517_s4 + $0x28] sm:$0xff]  }
  0xbb   :  { %v930_v55 = vsel %vm112_vm0, 1.0, %v1119_v43  ;;  %v929_v56 = vsel %vm111_vm1, 1.0, %v1119_v43  ;;  %1057 = vmatprep.subr.bf16.mxu0 %v1112_v38  ;;  %v1113_v43 = vld [vmem:[%s1517_s4 + $0x20] sm:$0xff]   ;;  %1087 = vmatprep.subr.bf16.mxu1 %v1112_v38 }
  0xbc   :  { %v152_v57 = vpack.c.bf16 %v930_v55, %v929_v56  ;;  %1058 = vmatpush3.bf16.msra.mxu0 %v1112_v38  ;;  %1095 = vmatpush3.bf16.msra.mxu1 %v1112_v38 }
  0xbd   :  { %1059 = vmatprep.subr.bf16.mxu0 %v1113_v43  ;;  %1088 = vmatprep.subr.bf16.mxu1 %v1113_v43 }
  0xbe   :  { %1030 = vmatmul.mubr.msk.bf16.gmra.mxu0 %vm289_vm4, %v152_v57  ;;  %vm588_vm4 = vcmask 523264  }
  0xc0   :  { %1060 = vmatpush3.bf16.msra.mxu0 %v1113_v43  ;;  %1096 = vmatpush3.bf16.msra.mxu1 %v1113_v43 }
  0xc1   :  { %1061 = vmatprep.subr.bf16.mxu0 %v1114_v60  ;;  %1089 = vmatprep.subr.bf16.mxu1 %v1114_v60 }
  0xc4   :  { %1062 = vmatpush3.bf16.msra.mxu0 %v1114_v60  ;;  %1097 = vmatpush3.bf16.msra.mxu1 %v1114_v60 }
  0xc5   :  { %1063 = vmatprep.subr.bf16.mxu0 %v1115_v61  ;;  %1090 = vmatprep.subr.bf16.mxu1 %v1115_v61 }
  0xc8   :  { %1064 = vmatpush3.bf16.msra.mxu0 %v1115_v61  ;;  %1098 = vmatpush3.bf16.msra.mxu1 %v1115_v61 }
  0xc9   :  { %1065 = vmatprep.subr.bf16.mxu0 %v1116_v62  ;;  %1091 = vmatprep.subr.bf16.mxu1 %v1116_v62 }
  0xcc   :  { %1066 = vmatpush3.bf16.msra.mxu0 %v1116_v62  ;;  %1099 = vmatpush3.bf16.msra.mxu1 %v1116_v62 }
  0xcd   :  { %1067 = vmatprep.subr.bf16.mxu0 %v1117_v63  ;;  %1092 = vmatprep.subr.bf16.mxu1 %v1117_v63 }
  0xd0   :  { %1068 = vmatpush3.bf16.msra.mxu0 %v1117_v63  ;;  %1100 = vmatpush3.bf16.msra.mxu1 %v1117_v63 }
 0x147   :  { %v1039_v0 = vpop.f32.mrf.mxu1 }
 0x149   :  { %v493_v1 = vpop.f32.mrf.mxu1 }
 0x14b   :  { %v1040_v2 = vpop.f32.mrf.mxu1 }
 0x14c   :  { %v557_v7 = vpack.c.bf16 %v1040_v2, %v1039_v0  ;;  %v1391_v0 = vld [vmem:[%s1518_s5] ss:$0 sm:$0xff] }
 0x14d   :  { %v496_v3 = vpop.f32.mrf.mxu1 }
 0x14e   :  { %v556_v4 = vpack.c.bf16 %v496_v3, %v493_v1 }
 0x14f   :  { %v1043_v5 = vpop.f32.mrf.mxu1 }
 0x150   :  { %572 = vrot.lane.b32.xlu0 %v556_v4, %s1120_s19  ;;  %v1397_v4 = vld [vmem:[%s1519_s6] ss:$0 sm:$0xff] }
 0x151   :  { %v509_v6 = vpop.f32.mrf.mxu1 }
 0x153   :  { %v1044_v8 = vpop.f32.mrf.mxu1 }
 0x154   :  { %574 = vrot.lane.b32.xlu0 %v557_v7, %s1120_s19  ;;  %v559_v13 = vpack.c.bf16 %v1044_v8, %v1043_v5 }
 0x155   :  { %v512_v9 = vpop.f32.mrf.mxu1 }
 0x156   :  { %v558_v10 = vpack.c.bf16 %v512_v9, %v509_v6 }
 0x157   :  { %v1047_v11 = vpop.f32.mrf.mxu1 }
 0x158   :  { %576 = vrot.lane.b32.xlu0 %v558_v10, %s1120_s19 }
 0x159   :  { %v525_v12 = vpop.f32.mrf.mxu1 }
 0x15b   :  { %v1048_v14 = vpop.f32.mrf.mxu1 }
 0x15c   :  { %578 = vrot.lane.b32.xlu0 %v559_v13, %s1120_s19  ;;  %v561_v19 = vpack.c.bf16 %v1048_v14, %v1047_v11 }
 0x15d   :  { %v528_v15 = vpop.f32.mrf.mxu1 }
 0x15e   :  { %v560_v16 = vpack.c.bf16 %v528_v15, %v525_v12 }
 0x15f   :  { %v1051_v17 = vpop.f32.mrf.mxu1 }
 0x160   :  { %580 = vrot.lane.b32.xlu1 %v560_v16, %s1120_s19 }
 0x161   :  { %v541_v18 = vpop.f32.mrf.mxu1 }
 0x163   :  { %v1052_v20 = vpop.f32.mrf.mxu1 }
 0x164   :  { %582 = vrot.lane.b32.xlu1 %v561_v19, %s1120_s19  ;;  %v563_v23 = vpack.c.bf16 %v1052_v20, %v1051_v17 }
 0x165   :  { %v544_v21 = vpop.f32.mrf.mxu1 }
 0x166   :  { %v562_v22 = vpack.c.bf16 %v544_v21, %v541_v18  ;;  %v1019_v24 = vpop.f32.mrf.mxu0 }
 0x168   :  { %584 = vrot.lane.b32.xlu1 %v562_v22, %s1120_s19  ;;  %v348_v25 = vpop.f32.mrf.mxu0 }
 0x16a   :  { %v1020_v26 = vpop.f32.mrf.mxu0 }
 0x16b   :  { %v412_v39 = vpack.c.bf16 %v1020_v26, %v1019_v24 }
 0x16c   :  { %586 = vrot.lane.b32.xlu1 %v563_v23, %s1120_s19  ;;  %v351_v27 = vpop.f32.mrf.mxu0 }
 0x16d   :  { %v411_v34 = vpack.c.bf16 %v351_v27, %v348_v25 }
 0x16e   :  { %v1023_v28 = vpop.f32.mrf.mxu0 }
 0x170   :  { %v364_v29 = vpop.f32.mrf.mxu0 }
 0x172   :  { %v1024_v30 = vpop.f32.mrf.mxu0 }
 0x173   :  { %v414_v48 = vpack.c.bf16 %v1024_v30, %v1023_v28 }
 0x174   :  { %v367_v31 = vpop.f32.mrf.mxu0 }
 0x175   :  { %v413_v44 = vpack.c.bf16 %v367_v31, %v364_v29 }
 0x176   :  { %v1027_v32 = vpop.f32.mrf.mxu0 }
 0x178   :  { %v380_v33 = vpop.f32.mrf.mxu0 }
 0x17a   :  { %v1028_v35 = vpop.f32.mrf.mxu0 }
 0x17b   :  { %v416_v56 = vpack.c.bf16 %v1028_v35, %v1027_v32 }
 0x17c   :  { %v383_v40 = vpop.f32.mrf.mxu0 }
 0x17d   :  { %v415_v52 = vpack.c.bf16 %v383_v40, %v380_v33 }
 0x17e   :  { %v1031_v45 = vpop.f32.mrf.mxu0 }
 0x180   :  { %v396_v49 = vpop.f32.mrf.mxu0 }
 0x182   :  { %v1032_v53 = vpop.f32.mrf.mxu0 }
 0x183   :  { %v418_v61 = vpack.c.bf16 %v1032_v53, %v1031_v45 }
 0x184   :  { %v399_v57 = vpop.f32.mrf.mxu0 }
 0x185   :  { %v417_v38 = vpack.c.bf16 %v399_v57, %v396_v49 }
 0x1c2   :  { %v573_v36 = vpop.permute.xlu0 %572 }
 0x1c3   :  { %v591_v37 = vsel %vm588_vm4, %v411_v34, %v573_v36 }
 0x1c4   :  { %1069 = vmatprep.mubr.bf16.mxu0 %v591_v37 }
 0x1c6   :  { %v575_v41 = vpop.permute.xlu0 %574 }
 0x1c7   :  { %v595_v42 = vsel %vm588_vm4, %v412_v39, %v575_v41 }
 0x1c8   :  { %1070 = vmatmul.mubr.bf16.vlgmr.msra.gmra.mxu0 %v595_v42 }
 0x1ca   :  { %v577_v46 = vpop.permute.xlu0 %576 }
 0x1cb   :  { %v599_v47 = vsel %vm588_vm4, %v413_v44, %v577_v46 }
 0x1cc   :  { %1073 = vmatprep.mubr.bf16.mxu0 %v599_v47 }
 0x1ce   :  { %v579_v50 = vpop.permute.xlu0 %578 }
 0x1cf   :  { %v603_v51 = vsel %vm588_vm4, %v414_v48, %v579_v50 }
 0x1d0   :  { %1074 = vmatmul.mubr.bf16.gmra.mxu0 %v603_v51 }
 0x1d2   :  { %v581_v54 = vpop.permute.xlu1 %580 }
 0x1d3   :  { %v607_v55 = vsel %vm588_vm4, %v415_v52, %v581_v54 }
 0x1d4   :  { %1077 = vmatprep.mubr.bf16.mxu1 %v607_v55 }
 0x1d6   :  { %v583_v58 = vpop.permute.xlu1 %582 }
 0x1d7   :  { %v611_v59 = vsel %vm588_vm4, %v416_v56, %v583_v58 }
 0x1d8   :  { %1078 = vmatmul.mubr.bf16.vlgmr.msra.gmra.mxu1 %v611_v59 }
 0x1da   :  { %v585_v43 = vpop.permute.xlu1 %584 }
 0x1db   :  { %v615_v60 = vsel %vm588_vm4, %v417_v38, %v585_v43 }
 0x1dc   :  { %1081 = vmatprep.mubr.bf16.mxu1 %v615_v60 }
 0x1de   :  { %v587_v62 = vpop.permute.xlu1 %586 }
 0x1df   :  { %v619_v63 = vsel %vm588_vm4, %v418_v61, %v587_v62 }
 0x1e0   :  { %1082 = vmatmul.mubr.bf16.gmra.mxu1 %v619_v63 }
 0x288   :  { %v1071_v1 = vpop.f32.mrf.mxu0 }
 0x289   :  { %v735_v2 = vadd.f32 %v1071_v1, %v1391_v0 }
 0x28a   :  { %v726_v3 = vpop.f32.mrf.mxu0 }
 0x28b   :  { %v791_v5 = vmax.f32 %v735_v2, 0.0  ;;  %v727_v6 = vadd.f32 %v1391_v0, %v726_v3 }
 0x28c   :  { %v1072_v7 = vpop.f32.mrf.mxu0 }
 0x28d   :  { %v789_v8 = vmax.f32 %v727_v6, 0.0  ;;  %v738_v9 = vadd.f32 %v1072_v7, %v1391_v0  ;;  %v814_v10 = vmul.f32 %v1397_v4, %v791_v5 }
 0x28e   :  { %v729_v11 = vpop.f32.mrf.mxu0 }
 0x28f   :  { %v792_v12 = vmax.f32 %v738_v9, 0.0  ;;  %v730_v13 = vadd.f32 %v1391_v0, %v729_v11  ;;  %v834_v14 = vsel %vm588_vm4, %v814_v10, 0.0  ;;  %v812_v15 = vmul.f32 %v1397_v4, %v789_v8 }
 0x290   :  { %835 = vadd.xlane.f32.xlu0 %v834_v14  ;;  %v1075_v16 = vpop.f32.mrf.mxu0 }
 0x291   :  { %v790_v17 = vmax.f32 %v730_v13, 0.0  ;;  %v751_v18 = vadd.f32 %v1075_v16, %v1391_v0  ;;  %v828_v20 = vsel %vm588_vm4, %v812_v15, 0.0  ;;  %v815_v24 = vmul.f32 %v1397_v4, %v792_v12 }
 0x292   :  { %v742_v19 = vpop.f32.mrf.mxu0 }
 0x293   :  { %v795_v21 = vmax.f32 %v751_v18, 0.0  ;;  %v743_v22 = vadd.f32 %v1391_v0, %v742_v19  ;;  %v813_v23 = vmul.f32 %v1397_v4, %v790_v17  ;;  %v837_v33 = vsel %vm588_vm4, %v815_v24, 0.0 }
 0x294   :  { %829 = vadd.xlane.f32.xlu0 %v828_v20  ;;  %v1076_v25 = vpop.f32.mrf.mxu0  ;;  %v877_v19 = vstv %s1520_s7 }
 0x295   :  { %v793_v26 = vmax.f32 %v743_v22, 0.0  ;;  %v754_v27 = vadd.f32 %v1076_v25, %v1391_v0  ;;  %v831_v28 = vsel %vm588_vm4, %v813_v23, 0.0  ;;  %v818_v29 = vmul.f32 %v1397_v4, %v795_v21 }
 0x296   :  { %832 = vadd.xlane.f32.xlu1 %v831_v28  ;;  %v745_v30 = vpop.f32.mrf.mxu0 }
 0x297   :  { %v796_v31 = vmax.f32 %v754_v27, 0.0  ;;  %v746_v32 = vadd.f32 %v1391_v0, %v745_v30  ;;  %v846_v35 = vsel %vm588_vm4, %v818_v29, 0.0  ;;  %v816_v40 = vmul.f32 %v1397_v4, %v793_v26 }
 0x298   :  { %v1079_v34 = vpop.f32.mrf.mxu1  ;;  %838 = vadd.xlane.f32.xlu0 %v837_v33 }
 0x299   :  { %v794_v36 = vmax.f32 %v746_v32, 0.0  ;;  %v767_v37 = vadd.f32 %v1079_v34, %v1391_v0  ;;  %v819_v39 = vmul.f32 %v1397_v4, %v796_v31  ;;  %v840_v50 = vsel %vm588_vm4, %v816_v40, 0.0 }
 0x29a   :  { %v758_v41 = vpop.f32.mrf.mxu1  ;;  %847 = vadd.xlane.f32.xlu1 %v846_v35 }
 0x29b   :  { %v799_v42 = vmax.f32 %v767_v37, 0.0  ;;  %v759_v44 = vadd.f32 %v1391_v0, %v758_v41  ;;  %v849_v45 = vsel %vm588_vm4, %v819_v39, 0.0  ;;  %v817_v46 = vmul.f32 %v1397_v4, %v794_v36 }
 0x29c   :  { %v1080_v47 = vpop.f32.mrf.mxu1  ;;  %850 = vadd.xlane.f32.xlu0 %v849_v45 }
 0x29d   :  { %v797_v48 = vmax.f32 %v759_v44, 0.0  ;;  %v770_v49 = vadd.f32 %v1080_v47, %v1391_v0  ;;  %v822_v51 = vmul.f32 %v1397_v4, %v799_v42  ;;  %v843_v55 = vsel %vm588_vm4, %v817_v46, 0.0 }
 0x29e   :  { %v761_v52 = vpop.f32.mrf.mxu1  ;;  %841 = vadd.xlane.f32.xlu1 %v840_v50 }
 0x29f   :  { %v800_v53 = vmax.f32 %v770_v49, 0.0  ;;  %v762_v54 = vadd.f32 %v1391_v0, %v761_v52  ;;  %v858_v57 = vsel %vm588_vm4, %v822_v51, 0.0  ;;  %v820_v43 = vmul.f32 %v1397_v4, %v797_v48 }
 0x2a0   :  { %v1083_v56 = vpop.f32.mrf.mxu1  ;;  %844 = vadd.xlane.f32.xlu0 %v843_v55 }
 0x2a1   :  { %v798_v58 = vmax.f32 %v762_v54, 0.0  ;;  %v783_v59 = vadd.f32 %v1083_v56, %v1391_v0  ;;  %v823_v38 = vmul.f32 %v1397_v4, %v800_v53  ;;  %v852_v6 = vsel %vm588_vm4, %v820_v43, 0.0 }
 0x2a2   :  { %v774_v60 = vpop.f32.mrf.mxu1  ;;  %859 = vadd.xlane.f32.xlu1 %v858_v57 }
 0x2a3   :  { %v775_v61 = vadd.f32 %v1391_v0, %v774_v60  ;;  %v861_v62 = vsel %vm588_vm4, %v823_v38, 0.0  ;;  %v821_v63 = vmul.f32 %v1397_v4, %v798_v58  ;;  %v803_v2 = vmax.f32 %v783_v59, 0.0 }
 0x2a4   :  { %v1084_v1 = vpop.f32.mrf.mxu1  ;;  %862 = vadd.xlane.f32.xlu0 %v861_v62 }
 0x2a5   :  { %v801_v3 = vmax.f32 %v775_v61, 0.0  ;;  %v786_v5 = vadd.f32 %v1084_v1, %v1391_v0  ;;  %v855_v9 = vsel %vm588_vm4, %v821_v63, 0.0  ;;  %v826_v14 = vmul.f32 %v1397_v4, %v803_v2 }
 0x2a6   :  { %v777_v7 = vpop.f32.mrf.mxu1  ;;  %853 = vadd.xlane.f32.xlu1 %v852_v6 }
 0x2a7   :  { %v778_v8 = vadd.f32 %v1391_v0, %v777_v7  ;;  %v824_v10 = vmul.f32 %v1397_v4, %v801_v3  ;;  %v804_v11 = vmax.f32 %v786_v5, 0.0  ;;  %v870_v17 = vsel %vm588_vm4, %v826_v14, 0.0 }
 0x2a8   :  { %856 = vadd.xlane.f32.xlu0 %v855_v9 }
 0x2a9   :  { %v802_v12 = vmax.f32 %v778_v8, 0.0  ;;  %v864_v13 = vsel %vm588_vm4, %v824_v10, 0.0  ;;  %v827_v0 = vmul.f32 %v1397_v4, %v804_v11 }
 0x2aa   :  { %865 = vadd.xlane.f32.xlu1 %v864_v13 }
 0x2ab   :  { %v825_v15 = vmul.f32 %v1397_v4, %v802_v12  ;;  %v873_v18 = vsel %vm588_vm4, %v827_v0, 0.0 }
 0x2ad   :  { %v867_v16 = vsel %vm588_vm4, %v825_v15, 0.0 }
 0x2ae   :  { %868 = vadd.xlane.f32.xlu0 %v867_v16  ;;  %871 = vadd.xlane.f32.xlu1 %v870_v17 }
 0x2b2   :  { %874 = vadd.xlane.f32.xlu0 %v873_v18 }
 0x319   :  { %v836_v20 = vpop.xlane.xlu0 %835 }
 0x31a   :  { %v880_v21 = vadd.f32 %v877_v19, %v836_v20 }
 0x31c   :  { %897 = vst.msk [vmem:[%s1521_s8 + $0x10] sm:$0xff] %vm894_vm2, %v880_v21 }
 0x31d   :  { %v830_v22 = vpop.xlane.xlu0 %829 }
 0x31e   :  { %v878_v23 = vadd.f32 %v877_v19, %v830_v22 }
 0x31f   :  { %v833_v4 = vpop.xlane.xlu1 %832 }
 0x320   :  { %895 = vst.msk [vmem:[%s1521_s8] sm:$0xff] %vm894_vm2, %v878_v23  ;;  %v879_v24 = vadd.f32 %v877_v19, %v833_v4 }
 0x321   :  { %v839_v25 = vpop.xlane.xlu0 %838 }
 0x322   :  { %896 = vst.msk [vmem:[%s1521_s8 + $0x8] sm:$0xff] %vm894_vm2, %v879_v24  ;;  %v881_v26 = vadd.f32 %v877_v19, %v839_v25 }
 0x323   :  { %v848_v27 = vpop.xlane.xlu1 %847 }
 0x324   :  { %898 = vst.msk [vmem:[%s1521_s8 + $0x18] sm:$0xff] %vm894_vm2, %v881_v26  ;;  %v884_v28 = vadd.f32 %v877_v19, %v848_v27 }
 0x325   :  { %v851_v29 = vpop.xlane.xlu0 %850 }
 0x326   :  { %901 = vst.msk [vmem:[%s1521_s8 + $0x30] sm:$0xff] %vm894_vm2, %v884_v28  ;;  %v885_v30 = vadd.f32 %v877_v19, %v851_v29 }
 0x327   :  { %v842_v31 = vpop.xlane.xlu1 %841 }
 0x328   :  { %902 = vst.msk [vmem:[%s1521_s8 + $0x38] sm:$0xff] %vm894_vm2, %v885_v30  ;;  %v882_v32 = vadd.f32 %v877_v19, %v842_v31 }
 0x329   :  { %v845_v33 = vpop.xlane.xlu0 %844 }
 0x32a   :  { %899 = vst.msk [vmem:[%s1521_s8 + $0x20] sm:$0xff] %vm894_vm2, %v882_v32  ;;  %v883_v34 = vadd.f32 %v877_v19, %v845_v33 }
 0x32b   :  { %v860_v35 = vpop.xlane.xlu1 %859 }
 0x32c   :  { %900 = vst.msk [vmem:[%s1521_s8 + $0x28] sm:$0xff] %vm894_vm2, %v883_v34  ;;  %v888_v36 = vadd.f32 %v877_v19, %v860_v35 }
 0x32d   :  { %v863_v37 = vpop.xlane.xlu0 %862 }
 0x32e   :  { %905 = vst.msk [vmem:[%s1521_s8 + $0x50] sm:$0xff] %vm894_vm2, %v888_v36  ;;  %v889_v39 = vadd.f32 %v877_v19, %v863_v37 }
 0x32f   :  { %v854_v40 = vpop.xlane.xlu1 %853 }
 0x330   :  { %906 = vst.msk [vmem:[%s1521_s8 + $0x58] sm:$0xff] %vm894_vm2, %v889_v39  ;;  %v886_v41 = vadd.f32 %v877_v19, %v854_v40 }
 0x331   :  { %v857_v42 = vpop.xlane.xlu0 %856 }
 0x332   :  { %903 = vst.msk [vmem:[%s1521_s8 + $0x40] sm:$0xff] %vm894_vm2, %v886_v41  ;;  %v887_v44 = vadd.f32 %v877_v19, %v857_v42 }
 0x333   :  { %v866_v45 = vpop.xlane.xlu1 %865 }
 0x334   :  { %904 = vst.msk [vmem:[%s1521_s8 + $0x48] sm:$0xff] %vm894_vm2, %v887_v44  ;;  %v890_v46 = vadd.f32 %v877_v19, %v866_v45 }
 0x336   :  { %907 = vst.msk [vmem:[%s1521_s8 + $0x60] sm:$0xff] %vm894_vm2, %v890_v46 }
 0x337   :  { %v872_v47 = vpop.xlane.xlu1 %871  ;;  %v869_v48 = vpop.xlane.xlu0 %868 }
 0x338   :  { %v892_v49 = vadd.f32 %v877_v19, %v872_v47  ;;  %v891_v50 = vadd.f32 %v877_v19, %v869_v48 }
 0x33a   :  { %909 = vst.msk [vmem:[%s1521_s8 + $0x70] sm:$0xff] %vm894_vm2, %v892_v49  ;;  %908 = vst.msk [vmem:[%s1521_s8 + $0x68] sm:$0xff] %vm894_vm2, %v891_v50 }
 0x33b   :  { %v875_v51 = vpop.xlane.xlu0 %874 }
 0x33c   :  { %v893_v52 = vadd.f32 %v877_v19, %v875_v51 }
 0x33e   :  { %910 = vst.msk [vmem:[%s1521_s8 + $0x78] sm:$0xff] %vm894_vm2, %v893_v52 }

</bundles_post_ra>
